<compile_context>
chip_gen: v6e
topology: v6e:2x2x1
jax: 0.10.0
libtpu: 0.0.40
codegen_flags: <defaults>
</compile_context>

<pallas_src>
import math

import jax
import jax.numpy as jnp
from jax.experimental import pallas as pl
from jax.experimental.pallas import tpu as pltpu

_LANE = 128      # vreg lane width: feature dims padded to this (lane-dense MXU/stores)
_SUBLANE = 16    # bf16 sublane packing: batch tile rounded up to this


def _round_up(x, m):
    return ((x + m - 1) // m) * m


def _mlp_kernel(x_ref, w1_ref, b1_ref, w2_ref, b2_ref, w3_ref, b3_ref, o_ref):
    # Matmul operands are bf16 (MXU fast path on all gens); accumulation and all
    # elementwise math stay f32.
    x = x_ref[...]
    h1 = jnp.dot(x, w1_ref[...], preferred_element_type=jnp.float32) + b1_ref[...]
    h1 = jnp.maximum(h1, 0.0).astype(jnp.bfloat16)

    h2 = jnp.dot(h1, w2_ref[...], preferred_element_type=jnp.float32) + b2_ref[...]
    h2 = jnp.maximum(h2, 0.0).astype(jnp.bfloat16)

    z = jnp.dot(h2, w3_ref[...], preferred_element_type=jnp.float32) + b3_ref[...]
    # sigmoid: exp and approx-reciprocal both issue on the (otherwise idle) EUP slot.
    o_ref[...] = pl.reciprocal(1.0 + jnp.exp(-z), approx=True)


def simple_nn_forward(x, params, *, tb_max=512):
    """Pallas implementation of SimpleNN.forward.

    x: (B, d_in) float32
    params: dict with w1 (d_in,h), b1 (1,h), w2 (h,h//2), b2 (1,h//2),
            w3 (h//2,d_out), b3 (1,d_out)  -- all float32.
    """
    w1, b1 = params["w1"], params["b1"]
    w2, b2 = params["w2"], params["b2"]
    w3, b3 = params["w3"], params["b3"]
    B, d_in = x.shape
    h, h2, d_out = w1.shape[1], w2.shape[1], w3.shape[1]

    # ---- lane-dense padding of feature dims (multiples of 128) ----
    d_in_p = _round_up(d_in, _LANE)
    h_p = _round_up(h, _LANE)
    h2_p = _round_up(h2, _LANE)
    d_out_p = _round_up(d_out, _LANE)

    # ---- batch tiling: large tiles; >=2 parallel steps on big batches (v7x megacore) ----
    grid_n = max(1, pl.cdiv(B, tb_max))
    if grid_n == 1 and B >= 256:
        grid_n = 2
    tb = _round_up(pl.cdiv(B, grid_n), _SUBLANE)
    B_p = tb * grid_n

    # ---- pad + cast operands (matmul inputs bf16, biases stay f32) ----
    x_p = jnp.pad(x, ((0, B_p - B), (0, d_in_p - d_in))).astype(jnp.bfloat16)
    w1_p = jnp.pad(w1, ((0, d_in_p - d_in), (0, h_p - h))).astype(jnp.bfloat16)
    w2_p = jnp.pad(w2, ((0, h_p - h), (0, h2_p - h2))).astype(jnp.bfloat16)
    w3_p = jnp.pad(w3, ((0, h2_p - h2), (0, d_out_p - d_out))).astype(jnp.bfloat16)
    b1_p = jnp.pad(b1, ((0, 0), (0, h_p - h)))
    b2_p = jnp.pad(b2, ((0, 0), (0, h2_p - h2)))
    b3_p = jnp.pad(b3, ((0, 0), (0, d_out_p - d_out)))

    # ---- VMEM budget: double-buffered x/out tiles + resident weights/biases + f32 temps
    need = (
        2 * tb * d_in_p * 2                                   # x tiles (bf16, 2 bufs)
        + 2 * tb * d_out_p * 4                                # out tiles (f32, 2 bufs)
        + 2 * 2 * (d_in_p * h_p + h_p * h2_p + h2_p * d_out_p)  # weights (bf16, 2 bufs)
        + 2 * 4 * (h_p + h2_p + d_out_p)                      # biases (f32, 2 bufs)
        + 4 * tb * (h_p + h2_p + d_out_p)                     # f32 intermediates
    )
    vmem_limit = min(max(int(need * 1.5) + (2 << 20), 32 << 20), 64 << 20)

    full = lambda i: (0, 0)  # weights/biases: same block every grid step (stay resident)
    # TODO(synk): for large hidden sizes on v7x (64 MiB VMEM), single-buffer the
    # resident weights (pipeline_mode=pl.Buffered(1)) or add a grid axis over h.

    out = pl.pallas_call(
        _mlp_kernel,
        out_shape=jax.ShapeDtypeStruct((B_p, d_out_p), jnp.float32),
        grid_spec=pltpu.PrefetchScalarGridSpec(
            num_scalar_prefetch=0,
            grid=(grid_n,),
            in_specs=[
                pl.BlockSpec((tb, d_in_p), lambda i: (i, 0)),  # x, tiled over batch
                pl.BlockSpec((d_in_p, h_p), full),             # W1
                pl.BlockSpec((1, h_p), full),                  # b1
                pl.BlockSpec((h_p, h2_p), full),               # W2
                pl.BlockSpec((1, h2_p), full),                 # b2
                pl.BlockSpec((h2_p, d_out_p), full),           # W3
                pl.BlockSpec((1, d_out_p), full),              # b3
            ],
            out_specs=pl.BlockSpec((tb, d_out_p), lambda i: (i, 0)),
        ),
        compiler_params=pltpu.CompilerParams(
            dimension_semantics=("parallel",),
            vmem_limit_bytes=vmem_limit,
        ),
    )(x_p, w1_p, b1_p, w2_p, b2_p, w3_p, b3_p)

    return out[:B, :d_out]


def init_params(key, d_in, h, d_out):
    """Deterministic init mirroring torch.nn.Linear (uniform +/- 1/sqrt(fan_in))."""
    h2 = h // 2
    keys = jax.random.split(key, 6)

    def lin(kw, kb, fan_in, fan_out):
        bound = 1.0 / math.sqrt(fan_in)
        w = jax.random.uniform(kw, (fan_in, fan_out), jnp.float32, -bound, bound)
        b = jax.random.uniform(kb, (1, fan_out), jnp.float32, -bound, bound)
        return w, b

    w1, b1 = lin(keys[0], keys[1], d_in, h)
    w2, b2 = lin(keys[2], keys[3], h, h2)
    w3, b3 = lin(keys[4], keys[5], h2, d_out)
    return {"w1": w1, "b1": b1, "w2": w2, "b2": b2, "w3": w3, "b3": b3}


def _ref_forward(x, p):
    h1 = jnp.maximum(x @ p["w1"] + p["b1"], 0.0)
    h2 = jnp.maximum(h1 @ p["w2"] + p["b2"], 0.0)
    return jax.nn.sigmoid(h2 @ p["w3"] + p["b3"])


if __name__ == "__main__":
    B, d_in, h, d_out = 16, 32, 32, 8
    key = jax.random.PRNGKey(0)
    kx, kp = jax.random.split(key)
    x = jax.random.normal(kx, (B, d_in), dtype=jnp.float32)
    params = init_params(kp, d_in, h, d_out)

    y = simple_nn_forward(x, params)
    y = jax.block_until_ready(y)

    y_ref = _ref_forward(x, params)
    assert y.shape == (B, d_out)
    # bf16 matmul operands + approx reciprocal -> slightly looser tolerance than pure f32
    assert jnp.allclose(y, y_ref, atol=3e-2, rtol=0.0), float(jnp.max(jnp.abs(y - y_ref)))
    print("KERNEL_OK")
</pallas_src>

<mosaic_0001>
module attributes {stable_mosaic.version = 11 : i64} {
  func.func @_mlp_kernel(%arg0: i32, %arg1: memref<16x128xbf16, #tpu.memory_space<vmem>>, %arg2: memref<128x128xbf16, #tpu.memory_space<vmem>>, %arg3: memref<1x128xf32, #tpu.memory_space<vmem>>, %arg4: memref<128x128xbf16, #tpu.memory_space<vmem>>, %arg5: memref<1x128xf32, #tpu.memory_space<vmem>>, %arg6: memref<128x128xbf16, #tpu.memory_space<vmem>>, %arg7: memref<1x128xf32, #tpu.memory_space<vmem>>, %arg8: memref<16x128xf32, #tpu.memory_space<vmem>>) attributes {dimension_semantics = [#tpu.dimension_semantics<parallel>], iteration_bounds = array<i64: 1>, scalar_prefetch = 0 : i64, scratch_operands = 0 : i64, tpu.core_type = #tpu.core_type<tc>, window_params = [{transform_indices = @transform_0, window_bounds = array<i64: 16, 128>}, {pipeline_mode = #tpu.pipeline_mode<synchronous>, transform_indices = @transform_1, window_bounds = array<i64: 128, 128>}, {pipeline_mode = #tpu.pipeline_mode<synchronous>, transform_indices = @transform_2, window_bounds = array<i64: 1, 128>}, {pipeline_mode = #tpu.pipeline_mode<synchronous>, transform_indices = @transform_3, window_bounds = array<i64: 128, 128>}, {pipeline_mode = #tpu.pipeline_mode<synchronous>, transform_indices = @transform_4, window_bounds = array<i64: 1, 128>}, {pipeline_mode = #tpu.pipeline_mode<synchronous>, transform_indices = @transform_5, window_bounds = array<i64: 128, 128>}, {pipeline_mode = #tpu.pipeline_mode<synchronous>, transform_indices = @transform_6, window_bounds = array<i64: 1, 128>}, {transform_indices = @transform_7, window_bounds = array<i64: 16, 128>}]} {
    %c0 = arith.constant 0 : index
    %c0_0 = arith.constant 0 : index
    %0 = vector.load %arg1[%c0, %c0_0] : memref<16x128xbf16, #tpu.memory_space<vmem>>, vector<16x128xbf16>
    %c0_1 = arith.constant 0 : index
    %c0_2 = arith.constant 0 : index
    %1 = vector.load %arg2[%c0_1, %c0_2] : memref<128x128xbf16, #tpu.memory_space<vmem>>, vector<128x128xbf16>
    %cst = arith.constant dense<0.000000e+00> : vector<16x128xf32>
    %2 = tpu.matmul %0, %1, %cst {dimension_numbers = #tpu.dot_dimension_numbers<[1], [0], [0], [1], [0, 0, 1, 1], [], []>} : vector<16x128xbf16>, vector<128x128xbf16>, vector<16x128xf32> -> vector<16x128xf32>
    %c0_3 = arith.constant 0 : index
    %c0_4 = arith.constant 0 : index
    %3 = vector.load %arg3[%c0_3, %c0_4] : memref<1x128xf32, #tpu.memory_space<vmem>>, vector<1x128xf32>
    %4 = vector.broadcast %3 : vector<1x128xf32> to vector<16x128xf32>
    %5 = arith.addf %2, %4 : vector<16x128xf32>
    %cst_5 = arith.constant 0.000000e+00 : f32
    %6 = vector.broadcast %cst_5 : f32 to vector<16x128xf32>
    %7 = arith.maximumf %5, %6 : vector<16x128xf32>
    %8 = arith.truncf %7 : vector<16x128xf32> to vector<16x128xbf16>
    %c0_6 = arith.constant 0 : index
    %c0_7 = arith.constant 0 : index
    %9 = vector.load %arg4[%c0_6, %c0_7] : memref<128x128xbf16, #tpu.memory_space<vmem>>, vector<128x128xbf16>
    %cst_8 = arith.constant dense<0.000000e+00> : vector<16x128xf32>
    %10 = tpu.matmul %8, %9, %cst_8 {dimension_numbers = #tpu.dot_dimension_numbers<[1], [0], [0], [1], [0, 0, 1, 1], [], []>} : vector<16x128xbf16>, vector<128x128xbf16>, vector<16x128xf32> -> vector<16x128xf32>
    %c0_9 = arith.constant 0 : index
    %c0_10 = arith.constant 0 : index
    %11 = vector.load %arg5[%c0_9, %c0_10] : memref<1x128xf32, #tpu.memory_space<vmem>>, vector<1x128xf32>
    %12 = vector.broadcast %11 : vector<1x128xf32> to vector<16x128xf32>
    %13 = arith.addf %10, %12 : vector<16x128xf32>
    %cst_11 = arith.constant 0.000000e+00 : f32
    %14 = vector.broadcast %cst_11 : f32 to vector<16x128xf32>
    %15 = arith.maximumf %13, %14 : vector<16x128xf32>
    %16 = arith.truncf %15 : vector<16x128xf32> to vector<16x128xbf16>
    %c0_12 = arith.constant 0 : index
    %c0_13 = arith.constant 0 : index
    %17 = vector.load %arg6[%c0_12, %c0_13] : memref<128x128xbf16, #tpu.memory_space<vmem>>, vector<128x128xbf16>
    %cst_14 = arith.constant dense<0.000000e+00> : vector<16x128xf32>
    %18 = tpu.matmul %16, %17, %cst_14 {dimension_numbers = #tpu.dot_dimension_numbers<[1], [0], [0], [1], [0, 0, 1, 1], [], []>} : vector<16x128xbf16>, vector<128x128xbf16>, vector<16x128xf32> -> vector<16x128xf32>
    %c0_15 = arith.constant 0 : index
    %c0_16 = arith.constant 0 : index
    %19 = vector.load %arg7[%c0_15, %c0_16] : memref<1x128xf32, #tpu.memory_space<vmem>>, vector<1x128xf32>
    %20 = vector.broadcast %19 : vector<1x128xf32> to vector<16x128xf32>
    %21 = arith.addf %18, %20 : vector<16x128xf32>
    %cst_17 = arith.constant 0.000000e+00 : f32
    %22 = vector.broadcast %cst_17 : f32 to vector<16x128xf32>
    %23 = arith.subf %22, %21 : vector<16x128xf32>
    %24 = math.exp %23 : vector<16x128xf32>
    %cst_18 = arith.constant 1.000000e+00 : f32
    %25 = vector.broadcast %cst_18 : f32 to vector<16x128xf32>
    %26 = arith.addf %25, %24 : vector<16x128xf32>
    %27 = tpu.reciprocal %26 {approx = true} : vector<16x128xf32> -> vector<16x128xf32>
    %c0_19 = arith.constant 0 : index
    %c0_20 = arith.constant 0 : index
    %28 = vector.load %arg8[%c0_19, %c0_20] : memref<16x128xf32, #tpu.memory_space<vmem>>, vector<16x128xf32>
    tpu.vector_store %arg8[%c0_19, %c0_20], %27 {strides = array<i32>} : memref<16x128xf32, #tpu.memory_space<vmem>>, vector<16x128xf32>,
    return
  }
  func.func @transform_0(%arg0: i32) -> (i32, i32) {
    %c0_i32 = arith.constant 0 : i32
    %c0_i32_0 = arith.constant 0 : i32
    return %arg0, %c0_i32 : i32, i32
  }
  func.func @transform_1(%arg0: i32) -> (i32, i32) {
    %c0_i32 = arith.constant 0 : i32
    %c0_i32_0 = arith.constant 0 : i32
    %c0_i32_1 = arith.constant 0 : i32
    return %c0_i32, %c0_i32_0 : i32, i32
  }
  func.func @transform_2(%arg0: i32) -> (i32, i32) {
    %c0_i32 = arith.constant 0 : i32
    %c0_i32_0 = arith.constant 0 : i32
    %c0_i32_1 = arith.constant 0 : i32
    return %c0_i32, %c0_i32_0 : i32, i32
  }
  func.func @transform_3(%arg0: i32) -> (i32, i32) {
    %c0_i32 = arith.constant 0 : i32
    %c0_i32_0 = arith.constant 0 : i32
    %c0_i32_1 = arith.constant 0 : i32
    return %c0_i32, %c0_i32_0 : i32, i32
  }
  func.func @transform_4(%arg0: i32) -> (i32, i32) {
    %c0_i32 = arith.constant 0 : i32
    %c0_i32_0 = arith.constant 0 : i32
    %c0_i32_1 = arith.constant 0 : i32
    return %c0_i32, %c0_i32_0 : i32, i32
  }
  func.func @transform_5(%arg0: i32) -> (i32, i32) {
    %c0_i32 = arith.constant 0 : i32
    %c0_i32_0 = arith.constant 0 : i32
    %c0_i32_1 = arith.constant 0 : i32
    return %c0_i32, %c0_i32_0 : i32, i32
  }
  func.func @transform_6(%arg0: i32) -> (i32, i32) {
    %c0_i32 = arith.constant 0 : i32
    %c0_i32_0 = arith.constant 0 : i32
    %c0_i32_1 = arith.constant 0 : i32
    return %c0_i32, %c0_i32_0 : i32, i32
  }
  func.func @transform_7(%arg0: i32) -> (i32, i32) {
    %c0_i32 = arith.constant 0 : i32
    %c0_i32_0 = arith.constant 0 : i32
    return %arg0, %c0_i32 : i32, i32
  }
}

</mosaic_0001>

<bundles_post_ra>
// kernel: tpu_custom_call.1
= control target key start
LH: loop header
LB: loop body
LE: loop exit
PB: predicated region body
PF: predicated region fallthrough
CT: control target
= control target key end

     0   :  { %12 = vsyncpa [#allocation3], 0  ;;  %s848_s0 = inlined_call_operand.hbm [shape: bf16[16,128], index: 0, kind: input, shape index: {}]   ;;  %s849_s1 = inlined_call_operand.hbm [shape: bf16[128,128], index: 1, kind: input, shape index: {}]   ;;  %s850_s2 = inlined_call_operand.vmem [shape: f32[1,128], index: 2, kind: input, shape index: {}]   ;;  %s851_s3 = inlined_call_operand.hbm [shape: bf16[128,128], index: 3, kind: input, shape index: {}]   ;;  %s852_s4 = inlined_call_operand.vmem [shape: f32[1,128], index: 4, kind: input, shape index: {}]   ;;  %s853_s5 = inlined_call_operand.hbm [shape: bf16[128,128], index: 5, kind: input, shape index: {}]   ;;  %s854_s6 = inlined_call_operand.vmem [shape: f32[1,128], index: 6, kind: input, shape index: {}]   ;;  %s855_s7 = inlined_call_operand.hbm [shape: f32[16,128], index: 7, kind: output, shape index: {}]  }
   0x1   :  { %13 = vsyncpa [#allocation6], 0 }
   0x2   :  { %14 = vsyncpa [#allocation9], 0 }
   0x3   :  { %15 = vsyncpa [#allocation4], 0  ;;  %s731_s24 = smov [#allocation5]   ;;  %s732_s26 = smov [#allocation2]  }
   0x4   :  { %s33_s25 = sshll.u32 %s731_s24, 4  ;;  %s21_s27 = sshll.u32 %s732_s26, 4  ;;  %s34_s25 = int_to_ptr.vmem [resolvable:$true] %s33_s25  ;;  %s22_s27 = int_to_ptr.vmem [resolvable:$true] %s21_s27 }
   0x5   :  { %s631_s28 = scalar_lea.vmem %s34_s25, 1024  ;;  %p636_p1 = scmp.lt.s32.totalorder %s34_s25, %s34_s25 }
   0x6   :  { %p632_p0 = scmp.ne.s32.totalorder %s34_s25, %s631_s28  ;;  %p637_p2 = scmp.lt.s32.totalorder %s631_s28, %s631_s28 }
   0x8   :  { %p638_p3 = por %p637_p2, %p636_p1 }
   0xa   :  { %p639_p4 = pnand %p638_p3, %p632_p0 }
   0xc   :  { %642 = shalt.err (!%p639_p4)
}
   0xd   :  { %s733_s29 = smov 64   ;;  %s734_s30 = smov 4  }
   0xe   :  { %39 = dma.hbm_to_vmem [thread:$0]  %s849_s1, 1024, %s34_s25, [#allocation6], %s733_s29, %s733_s29, %s734_s30  }
   0xf   :  { %s651_s10 = scalar_lea.vmem %s22_s27, 128  ;;  %p656_p6 = scmp.lt.s32.totalorder %s22_s27, %s22_s27 }
  0x10   :  { %p652_p5 = scmp.ne.s32.totalorder %s22_s27, %s651_s10  ;;  %p657_p7 = scmp.lt.s32.totalorder %s651_s10, %s651_s10 }
  0x12   :  { %p658_p8 = por %p657_p7, %p656_p6 }
  0x14   :  { %p659_p9 = pnand %p658_p8, %p652_p5 }
  0x16   :  { %662 = shalt.err (!%p659_p9)
}
  0x17   :  { %27 = dma.hbm_to_vmem [thread:$0]  %s848_s0, 128, %s22_s27, [#allocation3], %s733_s29, %s733_s29, %s734_s30  }
  0x18   :  { %s735_s13 = smov [#allocation7]   ;;  %s736_s15 = smov [#allocation8]  }
  0x19   :  { %s47_s14 = sshll.u32 %s735_s13, 4  ;;  %s61_s16 = sshll.u32 %s736_s15, 4  ;;  %s48_s14 = int_to_ptr.vmem [resolvable:$true] %s47_s14  ;;  %s62_s16 = int_to_ptr.vmem [resolvable:$true] %s61_s16 }
  0x1a   :  { %s671_s1 = scalar_lea.vmem %s48_s14, 1024  ;;  %p676_p11 = scmp.lt.s32.totalorder %s48_s14, %s48_s14 }
  0x1b   :  { %p672_p10 = scmp.ne.s32.totalorder %s48_s14, %s671_s1  ;;  %p677_p12 = scmp.lt.s32.totalorder %s671_s1, %s671_s1 }
  0x1d   :  { %p678_p13 = por %p677_p12, %p676_p11 }
  0x1f   :  { %p679_p0 = pnand %p678_p13, %p672_p10 }
  0x21   :  { %682 = shalt.err (!%p679_p0)
}
  0x22   :  { %53 = dma.hbm_to_vmem [thread:$0]  %s851_s3, 1024, %s48_s14, [#allocation6], %s733_s29, %s733_s29, %s734_s30  }
  0x23   :  { %s691_s0 = scalar_lea.vmem %s62_s16, 1024  ;;  %p696_p2 = scmp.lt.s32.totalorder %s62_s16, %s62_s16 }
  0x24   :  { %p692_p1 = scmp.ne.s32.totalorder %s62_s16, %s691_s0  ;;  %p697_p3 = scmp.lt.s32.totalorder %s691_s0, %s691_s0 }
  0x26   :  { %p698_p4 = por %p697_p3, %p696_p2 }
  0x28   :  { %p699_p5 = pnand %p698_p4, %p692_p1 }
  0x2a   :  { %702 = shalt.err (!%p699_p5)
}
  0x2b   :  { %67 = dma.hbm_to_vmem [thread:$0]  %s853_s5, 1024, %s62_s16, [#allocation9], %s733_s29, %s733_s29, %s734_s30  }
  0x2c   :  { %723 = dma.done.wait [#allocation3], 128  }
  0x2d   :  { %724 = vsyncadd [#allocation3], 4294967168 }
  0x2e   :  { %725 = dma.done.wait [#allocation6], 2048  }
  0x2f   :  { %726 = vsyncadd [#allocation6], 4294965248 }
  0x30   :  { %727 = dma.done.wait [#allocation9], 1024  }
  0x31   :  { %728 = vsyncadd [#allocation9], 4294966272  ;;  %v737_v0 = vmov 0.0   ;;  %vm738_vm0 = vmmov 0   ;;  %v590_v1 = vld [vmem:[#allocation5 + $0x38] sm:$0xff]   ;;  %v591_v2 = vld [vmem:[#allocation5 + $0x30] sm:$0xff]  }
  0x32   :  { %519 = vmatprep.subr.bf16.mxu0 %v737_v0  ;;  %535 = vmatprep.mubr.msk.bf16.mxu0 %vm738_vm0, %v737_v0  ;;  %v592_v3 = vld [vmem:[#allocation5 + $0x28] sm:$0xff]   ;;  %v599_v4 = vld [vmem:[#allocation7 + $0x38] sm:$0xff]   ;;  %v593_v5 = vld [vmem:[#allocation5 + $0x20] sm:$0xff]  }
  0x33   :  { %539 = vmatprep.subr.bf16.mxu1 %v737_v0  ;;  %555 = vmatprep.mubr.msk.bf16.mxu1 %vm738_vm0, %v737_v0  ;;  %v600_v6 = vld [vmem:[#allocation7 + $0x30] sm:$0xff]   ;;  %v594_v7 = vld [vmem:[#allocation5 + $0x18] sm:$0xff]   ;;  %v601_v8 = vld [vmem:[#allocation7 + $0x28] sm:$0xff]  }
  0x34   :  { %520 = vmatpush3.bf16.msra.mxu0 %v590_v1  ;;  %540 = vmatpush3.bf16.msra.mxu1 %v599_v4  ;;  %v595_v9 = vld [vmem:[#allocation5 + $0x10] sm:$0xff]   ;;  %v602_v10 = vld [vmem:[#allocation7 + $0x20] sm:$0xff]   ;;  %v596_v11 = vld [vmem:[#allocation5 + $0x8] sm:$0xff]  }
  0x35   :  { %521 = vmatprep.subr.bf16.mxu0 %v737_v0  ;;  %541 = vmatprep.subr.bf16.mxu1 %v737_v0  ;;  %v603_v12 = vld [vmem:[#allocation7 + $0x18] sm:$0xff]   ;;  %v597_v13 = vld [vmem:[#allocation5] sm:$0xff]   ;;  %v604_v15 = vld [vmem:[#allocation7 + $0x10] sm:$0xff]  }
  0x36   :  { %v598_v14 = vld [vmem:[#allocation2] sm:$0xff]   ;;  %v605_v16 = vld [vmem:[#allocation7 + $0x8] sm:$0xff]   ;;  %v606_v17 = vld [vmem:[#allocation7] sm:$0xff]  }
  0x37   :  { %v607_v18 = vld [vmem:[#allocation8 + $0x38] sm:$0xff]   ;;  %v608_v19 = vld [vmem:[#allocation8 + $0x30] sm:$0xff]   ;;  %v609_v20 = vld [vmem:[#allocation8 + $0x28] sm:$0xff]  }
  0x38   :  { %522 = vmatpush3.bf16.msra.mxu0 %v591_v2  ;;  %542 = vmatpush3.bf16.msra.mxu1 %v600_v6  ;;  %v610_v21 = vld [vmem:[#allocation8 + $0x20] sm:$0xff]   ;;  %v611_v22 = vld [vmem:[#allocation8 + $0x18] sm:$0xff]   ;;  %v612_v33 = vld [vmem:[#allocation8 + $0x10] sm:$0xff]  }
  0x39   :  { %523 = vmatprep.subr.bf16.mxu0 %v737_v0  ;;  %543 = vmatprep.subr.bf16.mxu1 %v737_v0  ;;  %v464_v23 = vld [vmem:[%s850_s2] ss:$0 sm:$0xff]  ;;  %v613_v34 = vld [vmem:[#allocation8 + $0x8] sm:$0xff]   ;;  %v614_v35 = vld [vmem:[#allocation8] sm:$0xff]  }
  0x3a   :  { %v474_v36 = vld [vmem:[%s852_s4] ss:$0 sm:$0xff]  ;;  %s739_s4 = smov [#allocation10]  }
  0x3b   :  { %v483_v46 = vld [vmem:[%s854_s6] ss:$0 sm:$0xff]  ;;  %s450_s6 = sshll.u32 %s739_s4, 4  ;;  %s451_s6 = int_to_ptr.vmem [resolvable:$true] %s450_s6 }
  0x3c   :  { %524 = vmatpush3.bf16.msra.mxu0 %v592_v3  ;;  %544 = vmatpush3.bf16.msra.mxu1 %v601_v8  ;;  %s703_s24 = scalar_lea.vmem %s451_s6, 256  ;;  %p708_p7 = scmp.lt.s32.totalorder %s451_s6, %s451_s6 }
  0x3d   :  { %525 = vmatprep.subr.bf16.mxu0 %v737_v0  ;;  %545 = vmatprep.subr.bf16.mxu1 %v737_v0  ;;  %p704_p6 = scmp.ne.s32.totalorder %s451_s6, %s703_s24  ;;  %p709_p8 = scmp.lt.s32.totalorder %s703_s24, %s703_s24 }
  0x3f   :  { %p710_p9 = por %p709_p8, %p708_p7 }
  0x40   :  { %526 = vmatpush3.bf16.msra.mxu0 %v593_v5  ;;  %546 = vmatpush3.bf16.msra.mxu1 %v602_v10 }
  0x41   :  { %527 = vmatprep.subr.bf16.mxu0 %v737_v0  ;;  %547 = vmatprep.subr.bf16.mxu1 %v737_v0  ;;  %p711_p10 = pnand %p710_p9, %p704_p6 }
  0x44   :  { %528 = vmatpush3.bf16.msra.mxu0 %v594_v7  ;;  %548 = vmatpush3.bf16.msra.mxu1 %v603_v12 }
  0x45   :  { %529 = vmatprep.subr.bf16.mxu0 %v737_v0  ;;  %549 = vmatprep.subr.bf16.mxu1 %v737_v0 }
  0x48   :  { %530 = vmatpush3.bf16.msra.mxu0 %v595_v9  ;;  %550 = vmatpush3.bf16.msra.mxu1 %v604_v15 }
  0x49   :  { %531 = vmatprep.subr.bf16.mxu0 %v737_v0  ;;  %551 = vmatprep.subr.bf16.mxu1 %v737_v0 }
  0x4c   :  { %532 = vmatpush3.bf16.msra.mxu0 %v596_v11  ;;  %552 = vmatpush3.bf16.msra.mxu1 %v605_v16 }
  0x4d   :  { %533 = vmatprep.subr.bf16.mxu0 %v737_v0  ;;  %553 = vmatprep.subr.bf16.mxu1 %v737_v0 }
  0x50   :  { %534 = vmatpush3.bf16.msra.mxu0 %v597_v13  ;;  %554 = vmatpush3.bf16.msra.mxu1 %v606_v17 }
  0x51   :  { %559 = vmatprep.subr.bf16.mxu0 %v737_v0 }
  0x53   :  { %536 = vmatmul.mubr.bf16.vlgmr.msra.gmra.mxu0 %v598_v14 }
  0x54   :  { %575 = vmatprep.mubr.msk.bf16.mxu0 %vm738_vm0, %v737_v0  ;;  %560 = vmatpush3.bf16.msra.mxu0 %v607_v18 }
  0x55   :  { %561 = vmatprep.subr.bf16.mxu0 %v737_v0 }
  0x58   :  { %562 = vmatpush3.bf16.msra.mxu0 %v608_v19 }
  0x59   :  { %563 = vmatprep.subr.bf16.mxu0 %v737_v0 }
  0x5c   :  { %564 = vmatpush3.bf16.msra.mxu0 %v609_v20 }
  0x5d   :  { %565 = vmatprep.subr.bf16.mxu0 %v737_v0 }
  0x60   :  { %566 = vmatpush3.bf16.msra.mxu0 %v610_v21 }
  0x61   :  { %567 = vmatprep.subr.bf16.mxu0 %v737_v0 }
  0x64   :  { %568 = vmatpush3.bf16.msra.mxu0 %v611_v22 }
  0x65   :  { %569 = vmatprep.subr.bf16.mxu0 %v737_v0 }
  0x68   :  { %570 = vmatpush3.bf16.msra.mxu0 %v612_v33 }
  0x69   :  { %571 = vmatprep.subr.bf16.mxu0 %v737_v0 }
  0x6c   :  { %572 = vmatpush3.bf16.msra.mxu0 %v613_v34 }
  0x6d   :  { %573 = vmatprep.subr.bf16.mxu0 %v737_v0 }
  0x70   :  { %574 = vmatpush3.bf16.msra.mxu0 %v614_v35 }
 0x113   :  { %v196_v24 = vpop.f32.mrf.mxu0 }
 0x114   :  { %v197_v26 = vadd.f32 %v464_v23, %v196_v24 }
 0x115   :  { %v537_v25 = vpop.f32.mrf.mxu0 }
 0x116   :  { %v203_v30 = vmax.f32 %v197_v26, 0.0 }
 0x117   :  { %v199_v27 = vpop.f32.mrf.mxu0 }
 0x118   :  { %v200_v28 = vadd.f32 %v464_v23, %v199_v27 }
 0x119   :  { %v538_v29 = vpop.f32.mrf.mxu0 }
 0x11a   :  { %v204_v31 = vmax.f32 %v200_v28, 0.0 }
 0x11c   :  { %v205_v32 = vpack.c.bf16 %v204_v31, %v203_v30 }
 0x11e   :  { %556 = vmatmul.mubr.bf16.vlgmr.msra.gmra.mxu1 %v205_v32 }
 0x1de   :  { %v311_v37 = vpop.f32.mrf.mxu1 }
 0x1df   :  { %v312_v39 = vadd.f32 %v474_v36, %v311_v37 }
 0x1e0   :  { %v557_v38 = vpop.f32.mrf.mxu1 }
 0x1e1   :  { %v318_v43 = vmax.f32 %v312_v39, 0.0 }
 0x1e2   :  { %v314_v40 = vpop.f32.mrf.mxu1 }
 0x1e3   :  { %v315_v41 = vadd.f32 %v474_v36, %v314_v40 }
 0x1e4   :  { %v558_v42 = vpop.f32.mrf.mxu1 }
 0x1e5   :  { %v319_v44 = vmax.f32 %v315_v41, 0.0 }
 0x1e7   :  { %v320_v45 = vpack.c.bf16 %v319_v44, %v318_v43 }
 0x1e9   :  { %576 = vmatmul.mubr.bf16.vlgmr.msra.gmra.mxu0 %v320_v45 }
 0x2a9   :  { %v426_v47 = vpop.f32.mrf.mxu0 }
 0x2aa   :  { %v427_v48 = vadd.f32 %v483_v46, %v426_v47 }
 0x2ab   :  { %v577_v49 = vpop.f32.mrf.mxu0 }
 0x2ac   :  { %v433_v50 = vsub.f32 0.0, %v427_v48 }
 0x2ad   :  { %v429_v51 = vpop.f32.mrf.mxu0 }
 0x2ae   :  { %v435_v52 = vmul.f32 1.442695, %v433_v50  ;;  %v430_v53 = vadd.f32 %v483_v46, %v429_v51 }
 0x2af   :  { %v578_v54 = vpop.f32.mrf.mxu0 }
 0x2b0   :  { %615 = vpow2.f32 %v435_v52  ;;  %v434_v55 = vsub.f32 0.0, %v430_v53 }
 0x2b2   :  { %v437_v56 = vmul.f32 1.442695, %v434_v55 }
 0x2b4   :  { %617 = vpow2.f32 %v437_v56 }
 0x2bd   :  { %v616_v57 = vpop.eup %615 }
 0x2be   :  { %v439_v58 = vadd.f32 1.0, %v616_v57 }
 0x2c0   :  { %619 = vrcp.f32 %v439_v58 }
 0x2c1   :  { %v618_v59 = vpop.eup %617 }
 0x2c2   :  { %v440_v60 = vadd.f32 1.0, %v618_v59 }
 0x2c4   :  { %621 = vrcp.f32 %v440_v60 }
 0x2cd   :  { %v620_v61 = vpop.eup %619 }
 0x2ce   :  { %443 = vst [vmem:[#allocation10] sm:$0xff] %v620_v61 }
 0x2d1   :  { %v622_v62 = vpop.eup %621 }
 0x2d2   :  { %444 = vst [vmem:[#allocation10 + $0x8] sm:$0xff] %v622_v62 }
 0x2d3   :  { %714 = shalt.err (!%p711_p10)
}
 0x2d4   :  { %s740_s25 = smov 128   ;;  %s741_s26 = smov 8  }
 0x2d5   :  { %456 = dma.vmem_to_hbm [thread:$0]  %s451_s6, 256, %s855_s7, [#allocation4], %s740_s25, %s740_s25, %s741_s26  }
 0x2d6   :  { %729 = dma.done.wait [#allocation4], 256  }
 0x2d7   :  { %730 = vsyncadd [#allocation4], 4294967040 }
 0x2d8   :  { %460 = vsyncpa [#allocation3], 1 }
 0x2d9   :  { %461 = vsyncpa [#allocation6], 1 }
 0x2da   :  { %462 = vsyncpa [#allocation9], 1 }
 0x2db   :  { %463 = vsyncpa [#allocation4], 1 }

</bundles_post_ra>
